<compile_context>
chip_gen: v5e
topology: v5e:2x2
jax: 0.10.0
libtpu: 0.0.40
codegen_flags: <defaults>
</compile_context>

<pallas_src>
import jax
import jax.numpy as jnp
from jax.experimental import pallas as pl
from jax.experimental.pallas import tpu as pltpu

LANES = 128
TILE_ROWS = 4096  # 4096 x 128 f32 = 2 MiB per-array block


def _sq_add_kernel(a_ref, b_ref, c_ref):
    a = a_ref[...]
    b = b_ref[...]
    # VPU elementwise: square-and-add, single pass over the tile.
    c_ref[...] = a * a + b * b


def add_model_forward(a, b):
    """Computes square(a) + square(b) elementwise on TPU via a Pallas kernel.

    a, b: float32 arrays of shape (n,). Any n >= 1 is accepted; inputs are
    zero-padded internally to a lane/tile-aligned size and the result is sliced
    back to length n.
    """
    assert a.shape == b.shape and a.ndim == 1
    n = a.shape[0]

    rows = pl.cdiv(n, LANES)
    # Single full-array block for small inputs; 2 MiB blocks + multi-step grid otherwise.
    tile_rows = rows if rows <= TILE_ROWS else TILE_ROWS
    grid_steps = pl.cdiv(rows, tile_rows)
    rows_padded = grid_steps * tile_rows
    n_padded = rows_padded * LANES

    if n_padded != n:
        pad = n_padded - n
        a = jnp.pad(a, (0, pad))
        b = jnp.pad(b, (0, pad))

    a2d = a.reshape(rows_padded, LANES)
    b2d = b.reshape(rows_padded, LANES)

    out = pl.pallas_call(
        _sq_add_kernel,
        out_shape=jax.ShapeDtypeStruct((rows_padded, LANES), a.dtype),
        grid_spec=pltpu.PrefetchScalarGridSpec(
            num_scalar_prefetch=0,
            grid=(grid_steps,),
            in_specs=[
                pl.BlockSpec((tile_rows, LANES), lambda i: (i, 0)),
                pl.BlockSpec((tile_rows, LANES), lambda i: (i, 0)),
            ],
            out_specs=pl.BlockSpec((tile_rows, LANES), lambda i: (i, 0)),
        ),
        compiler_params=pltpu.CompilerParams(
            dimension_semantics=("parallel",),
        ),
    )(a2d, b2d)

    if n_padded != n:
        return out.reshape(n_padded)[:n]
    return out.reshape(n)


if __name__ == "__main__":
    # AddModel(n): parameters a, b ~ N(0, 1), forward() returns a^2 + b^2.
    n = 1024  # small toy size
    key = jax.random.PRNGKey(0)
    ka, kb = jax.random.split(key)
    a = jax.random.normal(ka, (n,), dtype=jnp.float32)  # deterministic init of nn.Parameter a
    b = jax.random.normal(kb, (n,), dtype=jnp.float32)  # deterministic init of nn.Parameter b

    c = jax.block_until_ready(add_model_forward(a, b))
    ref = a * a + b * b
    assert c.shape == (n,)
    assert jnp.allclose(c, ref, atol=1e-6, rtol=1e-6)

    # Also exercise a size whose row count is not a multiple of the tile (and not of 8),
    # to confirm the internal padding / slice-back path.
    n2 = 1536
    k2a, k2b = jax.random.split(jax.random.PRNGKey(0), 2)
    a2 = jax.random.normal(k2a, (n2,), dtype=jnp.float32)
    b2 = jax.random.normal(k2b, (n2,), dtype=jnp.float32)
    c2 = jax.block_until_ready(add_model_forward(a2, b2))
    assert c2.shape == (n2,)
    assert jnp.allclose(c2, a2 * a2 + b2 * b2, atol=1e-6, rtol=1e-6)

    print("KERNEL_OK")
</pallas_src>

<mosaic_0001>
module attributes {stable_mosaic.version = 11 : i64} {
  func.func @_sq_add_kernel(%arg0: i32, %arg1: memref<8x128xf32, #tpu.memory_space<vmem>>, %arg2: memref<8x128xf32, #tpu.memory_space<vmem>>, %arg3: memref<8x128xf32, #tpu.memory_space<vmem>>) attributes {dimension_semantics = [#tpu.dimension_semantics<parallel>], iteration_bounds = array<i64: 1>, scalar_prefetch = 0 : i64, scratch_operands = 0 : i64, tpu.core_type = #tpu.core_type<tc>, window_params = [{transform_indices = @transform_0, window_bounds = array<i64: 8, 128>}, {transform_indices = @transform_1, window_bounds = array<i64: 8, 128>}, {transform_indices = @transform_2, window_bounds = array<i64: 8, 128>}]} {
    %c0 = arith.constant 0 : index
    %c0_0 = arith.constant 0 : index
    %0 = vector.load %arg1[%c0, %c0_0] : memref<8x128xf32, #tpu.memory_space<vmem>>, vector<8x128xf32>
    %c0_1 = arith.constant 0 : index
    %c0_2 = arith.constant 0 : index
    %1 = vector.load %arg2[%c0_1, %c0_2] : memref<8x128xf32, #tpu.memory_space<vmem>>, vector<8x128xf32>
    %2 = arith.mulf %0, %0 : vector<8x128xf32>
    %3 = arith.mulf %1, %1 : vector<8x128xf32>
    %4 = arith.addf %2, %3 : vector<8x128xf32>
    %c0_3 = arith.constant 0 : index
    %c0_4 = arith.constant 0 : index
    %5 = vector.load %arg3[%c0_3, %c0_4] : memref<8x128xf32, #tpu.memory_space<vmem>>, vector<8x128xf32>
    tpu.vector_store %arg3[%c0_3, %c0_4], %4 {strides = array<i32>} : memref<8x128xf32, #tpu.memory_space<vmem>>, vector<8x128xf32>,
    return
  }
  func.func @transform_0(%arg0: i32) -> (i32, i32) {
    %c0_i32 = arith.constant 0 : i32
    %c0_i32_0 = arith.constant 0 : i32
    return %arg0, %c0_i32 : i32, i32
  }
  func.func @transform_1(%arg0: i32) -> (i32, i32) {
    %c0_i32 = arith.constant 0 : i32
    %c0_i32_0 = arith.constant 0 : i32
    return %arg0, %c0_i32 : i32, i32
  }
  func.func @transform_2(%arg0: i32) -> (i32, i32) {
    %c0_i32 = arith.constant 0 : i32
    %c0_i32_0 = arith.constant 0 : i32
    return %arg0, %c0_i32 : i32, i32
  }
}

</mosaic_0001>

<bundles_post_ra>
// kernel: tpu_custom_call.1
= control target key start
LH: loop header
LB: loop body
LE: loop exit
PB: predicated region body
PF: predicated region fallthrough
CT: control target
= control target key end

     0   :  { %7 = vsyncpa [#allocation3], 0  ;;  %s172_s0 = inlined_call_operand.hbm [shape: f32[8,128], index: 0, kind: input, shape index: {}]   ;;  %s173_s1 = inlined_call_operand.hbm [shape: f32[8,128], index: 1, kind: input, shape index: {}]   ;;  %s174_s2 = inlined_call_operand.hbm [shape: f32[8,128], index: 2, kind: output, shape index: {}]  }
   0x1   :  { %8 = vsyncpa [#allocation6], 0 }
   0x2   :  { %9 = vsyncpa [#allocation4], 0  ;;  %s15_s11 = sshll.u32 %s172_s0, 4  ;;  %s145_s12 = smov [#allocation2]   ;;  %s16_s11 = int_to_ptr.hbm [resolvable:$true] %s15_s11 }
   0x3   :  { %s17_s13 = sshll.u32 %s145_s12, 4  ;;  %s26_s16 = sshll.u32 %s173_s1, 4  ;;  %s18_s13 = int_to_ptr.vmem [resolvable:$true] %s17_s13  ;;  %s27_s16 = int_to_ptr.hbm [resolvable:$true] %s26_s16 }
   0x4   :  { %20 = dma.hbm_to_vmem [thread:$0]  %s16_s11, 128, %s18_s13, [#allocation3]  }
   0x5   :  { %s146_s17 = smov [#allocation5]  }
   0x6   :  { %s28_s18 = sshll.u32 %s146_s17, 4  ;;  %s29_s18 = int_to_ptr.vmem [resolvable:$true] %s28_s18 }
   0x7   :  { %31 = dma.hbm_to_vmem [thread:$0]  %s27_s16, 128, %s29_s18, [#allocation6]  }
   0x8   :  { %139 = dma.done.wait [#allocation3], 128  }
   0x9   :  { %140 = vsyncadd [#allocation3], 4294967168 }
   0xa   :  { %141 = dma.done.wait [#allocation6], 128  }
   0xb   :  { %142 = vsyncadd [#allocation6], 4294967168  ;;  %v40_v0 = vld [vmem:[#allocation2] sm:$0xff]  ;;  %v41_v1 = vld [vmem:[#allocation5] sm:$0xff]  ;;  %s147_s0 = smov [#allocation7]   ;;  %s53_s22 = sshll.u32 %s174_s2, 4  ;;  %s54_s22 = int_to_ptr.hbm [resolvable:$true] %s53_s22 }
   0xc   :  { %s51_s19 = sshll.u32 %s147_s0, 4  ;;  %v42_v2 = vmul.f32 %v40_v0, %v40_v0  ;;  %v43_v3 = vmul.f32 %v41_v1, %v41_v1  ;;  %s52_s19 = int_to_ptr.vmem [resolvable:$true] %s51_s19 }
   0xe   :  { %v44_v4 = vadd.f32 %v43_v3, %v42_v2 }
  0x10   :  { %45 = vst [vmem:[#allocation7] sm:$0xff] %v44_v4 }
  0x11   :  { %56 = dma.vmem_to_hbm [thread:$0]  %s52_s19, 128, %s54_s22, [#allocation4]  }
  0x12   :  { %143 = dma.done.wait [#allocation4], 128  }
  0x13   :  { %144 = vsyncadd [#allocation4], 4294967168 }
  0x14   :  { %61 = vsyncpa [#allocation3], 1 }
  0x15   :  { %62 = vsyncpa [#allocation6], 1 }
  0x16   :  { %63 = vsyncpa [#allocation4], 1 }

</bundles_post_ra>
